<compile_context>
chip_gen: v5e
topology: v5e:2x2
jax: 0.10.0
libtpu: 0.0.40
codegen_flags: <defaults>
</compile_context>

<pallas_src>
import functools

import jax
import jax.numpy as jnp
import numpy as np
from jax.experimental import pallas as pl
from jax.experimental.pallas import tpu as pltpu


def _concat_kernel(*refs, offsets, sizes):
    """Copy each input block into its channel slice of the output block."""
    *x_refs, o_ref = refs
    # Static Python unroll over inputs; each is one wide (lane-dense) store.
    for x_ref, off, c in zip(x_refs, offsets, sizes):
        o_ref[:, off:off + c, :] = x_ref[...]


def _vmem_capacity_bytes():
    try:
        cap = getattr(pltpu.get_tpu_info(), "vmem_capacity_bytes", None)
        if cap:
            return int(cap)
    except Exception:
        pass
    return 64 * 1024 * 1024  # conservative (v7x-sized) fallback


def concat_pallas(xs, dim=1, *, vmem_budget=None, vmem_limit_bytes=None):
    """torch.cat(xs, dim) as a single Pallas TPU kernel."""
    xs = [jnp.asarray(x) for x in xs]
    nd = xs[0].ndim
    d = dim % nd
    ref_shape = xs[0].shape
    dtype = jnp.result_type(*xs)
    xs = [x.astype(dtype) for x in xs]
    for x in xs[1:]:
        assert x.ndim == nd
        assert x.shape[:d] == ref_shape[:d] and x.shape[d + 1:] == ref_shape[d + 1:]

    C_total = int(sum(int(x.shape[d]) for x in xs))
    out_full_shape = ref_shape[:d] + (C_total,) + ref_shape[d + 1:]

    # Degenerate cases: empty along concat axis / empty output / single input.
    xs = [x for x in xs if int(x.shape[d]) > 0]
    if len(xs) == 0 or any(s == 0 for s in out_full_shape):
        return jnp.zeros(out_full_shape, dtype)
    if len(xs) == 1:
        return xs[0].reshape(out_full_shape)

    # Canonical 3-D problem: (lead, C_i, trail), concatenated along the middle axis.
    lead = int(np.prod(ref_shape[:d], dtype=np.int64)) if d > 0 else 1
    trail = int(np.prod(ref_shape[d + 1:], dtype=np.int64)) if d + 1 < nd else 1
    Cs = [int(x.shape[d]) for x in xs]
    offsets = [int(v) for v in np.cumsum([0] + Cs[:-1])]
    xs3 = [x.reshape(lead, c, trail) for x, c in zip(xs, Cs)]  # free contiguous reshapes

    # --- Tile selection (per-generation VMEM budget) --------------------------------
    itemsize = jnp.dtype(dtype).itemsize
    vmem_cap = _vmem_capacity_bytes()
    budget = int(vmem_budget) if vmem_budget is not None else int(vmem_cap * 0.60)
    vmem_limit = (int(vmem_limit_bytes) if vmem_limit_bytes is not None
                  else int(vmem_cap * 0.85))

    # Bytes per (lead-row, lane-column) of working set: inputs + output, double-buffered.
    per_col = 4 * C_total * itemsize
    max_cols = max(128, budget // per_col)               # lane columns at Lb == 1
    if max_cols >= trail:
        t = trail                                        # full trailing extent per tile
        lb = max(1, min(lead, budget // max(1, per_col * trail)))
    else:
        t = max(128, (max_cols // 128) * 128)            # multiple of 128; ragged edge OK
        lb = 1

    # Make sure v7x's two TensorCores both get work for non-trivial tensors.
    out_bytes = lead * C_total * trail * itemsize
    if pl.cdiv(lead, lb) * pl.cdiv(trail, t) == 1 and out_bytes >= (1 << 20):
        if lead >= 2:
            lb = pl.cdiv(lead, 2)
        elif trail >= 256:
            t = ((pl.cdiv(trail, 2) + 127) // 128) * 128

    grid = (pl.cdiv(lead, lb), pl.cdiv(trail, t))
    kernel = functools.partial(_concat_kernel, offsets=offsets, sizes=Cs)

    in_specs = [pl.BlockSpec((lb, c, t), lambda b, j: (b, 0, j)) for c in Cs]
    out_specs = pl.BlockSpec((lb, C_total, t), lambda b, j: (b, 0, j))

    out = pl.pallas_call(
        kernel,
        out_shape=jax.ShapeDtypeStruct((lead, C_total, trail), dtype),
        grid_spec=pltpu.PrefetchScalarGridSpec(
            num_scalar_prefetch=0,
            grid=grid,
            in_specs=in_specs,
            out_specs=out_specs,
        ),
        compiler_params=pltpu.CompilerParams(
            dimension_semantics=("parallel", "parallel"),
            vmem_limit_bytes=vmem_limit,
        ),
    )(*xs3)

    # Splitting (lead, C_total, trail) back into the original dims is a free reshape.
    return out.reshape(out_full_shape)


if __name__ == "__main__":
    key = jax.random.PRNGKey(0)
    k0, k1, k2, k3, k4, k5, k6 = jax.random.split(key, 7)

    # Case 1: typical YOLO use — NCHW tensors concatenated on the channel axis.
    x0 = jax.random.normal(k0, (2, 4, 16, 16), jnp.float32)
    x1 = jax.random.normal(k1, (2, 6, 16, 16), jnp.float32)
    out = jax.block_until_ready(concat_pallas([x0, x1], dim=1))
    ref = jax.block_until_ready(jnp.concatenate([x0, x1], axis=1))
    assert out.shape == (2, 10, 16, 16), out.shape
    np.testing.assert_allclose(np.asarray(out), np.asarray(ref), rtol=0, atol=0)

    # Case 2: three inputs, odd spatial size (trail=100 handled with zero padding ops:
    # lane tile equals the full trailing extent, no jnp.pad / slice-back).
    y0 = jax.random.normal(k2, (2, 3, 10, 10), jnp.float32)
    y1 = jax.random.normal(k3, (2, 5, 10, 10), jnp.float32)
    y2 = jax.random.normal(k4, (2, 4, 10, 10), jnp.float32)
    out2 = jax.block_until_ready(concat_pallas([y0, y1, y2], dim=1))
    ref2 = jax.block_until_ready(jnp.concatenate([y0, y1, y2], axis=1))
    np.testing.assert_allclose(np.asarray(out2), np.asarray(ref2), rtol=0, atol=0)

    # Case 3: force a tiny VMEM budget so the lane axis is tiled (t=128) with a ragged
    # edge tile — exercises the masked edge-block path that replaced the old jnp.pad.
    z0 = jax.random.normal(k5, (2, 5, 10, 20), jnp.float32)   # trail = 200
    z1 = jax.random.normal(k6, (2, 3, 10, 20), jnp.float32)
    out3 = jax.block_until_ready(concat_pallas([z0, z1], dim=1, vmem_budget=20000))
    ref3 = jax.block_until_ready(jnp.concatenate([z0, z1], axis=1))
    np.testing.assert_allclose(np.asarray(out3), np.asarray(ref3), rtol=0, atol=0)

    print("KERNEL_OK")
</pallas_src>

<mosaic_0001>
module attributes {stable_mosaic.version = 11 : i64} {
  func.func @_concat_kernel(%arg0: i32, %arg1: i32, %arg2: memref<2x4x256xf32, #tpu.memory_space<vmem>>, %arg3: memref<2x6x256xf32, #tpu.memory_space<vmem>>, %arg4: memref<2x10x256xf32, #tpu.memory_space<vmem>>) attributes {dimension_semantics = [#tpu.dimension_semantics<parallel>, #tpu.dimension_semantics<parallel>], iteration_bounds = array<i64: 1, 1>, scalar_prefetch = 0 : i64, scratch_operands = 0 : i64, tpu.core_type = #tpu.core_type<tc>, window_params = [{transform_indices = @transform_0, window_bounds = array<i64: 2, 4, 256>}, {transform_indices = @transform_1, window_bounds = array<i64: 2, 6, 256>}, {transform_indices = @transform_2, window_bounds = array<i64: 2, 10, 256>}]} {
    %c0 = arith.constant 0 : index
    %c0_0 = arith.constant 0 : index
    %c0_1 = arith.constant 0 : index
    %0 = vector.load %arg2[%c0, %c0_0, %c0_1] : memref<2x4x256xf32, #tpu.memory_space<vmem>>, vector<2x4x256xf32>
    %c0_2 = arith.constant 0 : index
    %c0_3 = arith.constant 0 : index
    %c0_4 = arith.constant 0 : index
    %1 = vector.load %arg4[%c0_2, %c0_3, %c0_4] : memref<2x10x256xf32, #tpu.memory_space<vmem>>, vector<2x4x256xf32>
    tpu.vector_store %arg4[%c0_2, %c0_3, %c0_4], %0 {strides = array<i32>} : memref<2x10x256xf32, #tpu.memory_space<vmem>>, vector<2x4x256xf32>,
    %c0_5 = arith.constant 0 : index
    %c0_6 = arith.constant 0 : index
    %c0_7 = arith.constant 0 : index
    %2 = vector.load %arg3[%c0_5, %c0_6, %c0_7] : memref<2x6x256xf32, #tpu.memory_space<vmem>>, vector<2x6x256xf32>
    %c0_8 = arith.constant 0 : index
    %c4 = arith.constant 4 : index
    %c0_9 = arith.constant 0 : index
    %3 = vector.load %arg4[%c0_8, %c4, %c0_9] : memref<2x10x256xf32, #tpu.memory_space<vmem>>, vector<2x6x256xf32>
    tpu.vector_store %arg4[%c0_8, %c4, %c0_9], %2 {strides = array<i32>} : memref<2x10x256xf32, #tpu.memory_space<vmem>>, vector<2x6x256xf32>,
    return
  }
  func.func @transform_0(%arg0: i32, %arg1: i32) -> (i32, i32, i32) {
    %c0_i32 = arith.constant 0 : i32
    %c0_i32_0 = arith.constant 0 : i32
    return %arg0, %c0_i32, %arg1 : i32, i32, i32
  }
  func.func @transform_1(%arg0: i32, %arg1: i32) -> (i32, i32, i32) {
    %c0_i32 = arith.constant 0 : i32
    %c0_i32_0 = arith.constant 0 : i32
    return %arg0, %c0_i32, %arg1 : i32, i32, i32
  }
  func.func @transform_2(%arg0: i32, %arg1: i32) -> (i32, i32, i32) {
    %c0_i32 = arith.constant 0 : i32
    %c0_i32_0 = arith.constant 0 : i32
    return %arg0, %c0_i32, %arg1 : i32, i32, i32
  }
}

</mosaic_0001>

<bundles_post_ra>
// kernel: tpu_custom_call.1
= control target key start
LH: loop header
LB: loop body
LE: loop exit
PB: predicated region body
PF: predicated region fallthrough
CT: control target
= control target key end

     0   :  { %s127_s0 = inlined_call_operand.vmem [shape: f32[2,4,256], index: 0, kind: input, shape index: {}]   ;;  %s128_s1 = inlined_call_operand.vmem [shape: f32[2,6,256], index: 1, kind: input, shape index: {}]   ;;  %s129_s2 = inlined_call_operand.vmem [shape: f32[2,10,256], index: 2, kind: output, shape index: {}]  }
   0x1   :  { %v11_v0 = vld [vmem:[%s127_s0] sm:$0xff]  ;;  %v12_v1 = vld [vmem:[%s127_s0 + $0x8] sm:$0xff]  ;;  %v32_v6 = vld [vmem:[%s128_s1 + $0x10] sm:$0x3f] }
   0x2   :  { %v30_v2 = vld [vmem:[%s128_s1] sm:$0x3f]  ;;  %15 = vst [vmem:[#allocation1] ss:$2 sm:$0xff] %v11_v0  ;;  %v31_v4 = vld [vmem:[%s128_s1 + $0x8] sm:$0x3f] }
   0x3   :  { %v38_v3 = vrot.slane %v30_v2, 4  ;;  %19 = vst [vmem:[#allocation1 + $0x10] ss:$2 sm:$0xff] %v12_v1  ;;  %v39_v5 = vrot.slane %v31_v4, 4  ;;  %v40_v7 = vrot.slane %v32_v6, 4 }
   0x4   :  { %v33_v8 = vld [vmem:[%s128_s1 + $0x18] sm:$0x3f] }
   0x5   :  { %46 = vst [vmem:[%s129_s2] sm:$0xf0] %v38_v3  ;;  %v41_v13 = vrot.slane %v33_v8, 4 }
   0x6   :  { %48 = vst [vmem:[%s129_s2 + $0x10] sm:$0x3] %v38_v3 }
   0x7   :  { %47 = vst [vmem:[%s129_s2 + $0x8] sm:$0xf0] %v39_v5 }
   0x8   :  { %49 = vst [vmem:[%s129_s2 + $0x18] sm:$0x3] %v39_v5 }
   0x9   :  { %50 = vst [vmem:[%s129_s2 + $0x20] sm:$0xf0] %v40_v7  ;;  %v16_v9 = vld.sshfl [vmem:[#allocation1] sm:$0xff pattern:$0x75316420] }
   0xa   :  { %v17_v10 = vld.sshfl [vmem:[#allocation1 + $0x8] sm:$0xff pattern:$0x75316420]  ;;  %26 = vst [vmem:[%s129_s2] sm:$0xf] %v16_v9 }
   0xb   :  { %v20_v11 = vld.sshfl [vmem:[#allocation1 + $0x10] sm:$0xff pattern:$0x75316420]  ;;  %27 = vst [vmem:[%s129_s2 + $0x8] sm:$0xf] %v17_v10 }
   0xc   :  { %v21_v12 = vld.sshfl [vmem:[#allocation1 + $0x18] sm:$0xff pattern:$0x75316420]  ;;  %28 = vst [vmem:[%s129_s2 + $0x20] sm:$0xf] %v20_v11 }
   0xd   :  { %29 = vst [vmem:[%s129_s2 + $0x28] sm:$0xf] %v21_v12 }
   0xe   :  { %52 = vst [vmem:[%s129_s2 + $0x30] sm:$0x3] %v40_v7 }
   0xf   :  { %51 = vst [vmem:[%s129_s2 + $0x28] sm:$0xf0] %v41_v13 }
  0x10   :  { %53 = vst [vmem:[%s129_s2 + $0x38] sm:$0x3] %v41_v13 }

</bundles_post_ra>
